<compile_context>
chip_gen: v7x
topology: tpu7x:2x2x1
jax: 0.10.0
libtpu: 0.0.40
codegen_flags: <defaults>
</compile_context>

<pallas_src>
import functools
import math

import jax
import jax.numpy as jnp
from jax.experimental import pallas as pl
from jax.experimental.pallas import tpu as pltpu


def _layernorm(z, gamma, beta, eps=1e-5):
    mu = jnp.mean(z, axis=-1, keepdims=True)
    var = jnp.mean((z - mu) ** 2, axis=-1, keepdims=True)
    return (z - mu) * jax.lax.rsqrt(var + eps) * gamma + beta


def encoder_layer_kernel(x_ref, wqkv_ref, bqkv_ref, wo_ref, w1_ref, b1_ref,
                         w2_ref, vec_ref, out_ref, attn_ref, *, bg, L, D):
    f32, bf16 = jnp.float32, jnp.bfloat16

    # packed (6, D) vector params: rows = [bo, b2, g1, beta1, g2, beta2]
    bo, b2 = vec_ref[0:1, :], vec_ref[1:2, :]
    g1, beta1 = vec_ref[2:3, :], vec_ref[3:4, :]
    g2, beta2 = vec_ref[4:5, :], vec_ref[5:6, :]

    wqkv = wqkv_ref[...]        # bf16 (D, 3D); 1/sqrt(D) folded into q columns
    wo = wo_ref[...]            # bf16 (D, D)
    w1 = w1_ref[...]            # bf16 (D, d_ff)
    w2 = w2_ref[...]            # bf16 (d_ff, D)
    bqkv = bqkv_ref[...]        # f32 (1, 3D); 1/sqrt(D) folded into q part
    b1 = b1_ref[...]            # f32 (1, d_ff)

    x = x_ref[...].astype(f32)                                      # (bg, L, D)

    # --- fused Q/K/V projection, batched over the whole slab -----------------
    qkv = jnp.einsum('bld,df->blf', x.astype(bf16), wqkv,
                     preferred_element_type=f32) + bqkv              # (bg, L, 3D)
    q = qkv[..., 0:D]
    k = qkv[..., D:2 * D]
    v = qkv[..., 2 * D:3 * D]

    # --- AnomalyAttention (mask_flag=False): softmax(scale * QK^T) -----------
    # scale already folded into the q projection.
    scores = jnp.einsum('bqd,bkd->bqk', q.astype(bf16), k.astype(bf16),
                        preferred_element_type=f32)                  # (bg, L, L)
    m = jnp.max(scores, axis=-1, keepdims=True)
    e = jnp.exp(scores - m)
    denom = jnp.sum(e, axis=-1, keepdims=True)
    series = e * pl.reciprocal(denom, approx=True)
    attn_ref[...] = series.astype(attn_ref.dtype)

    av = jnp.einsum('bqk,bkd->bqd', series.astype(bf16), v.astype(bf16),
                    preferred_element_type=f32)                      # (bg, L, D)
    new_x = jnp.einsum('bld,df->blf', av.astype(bf16), wo,
                       preferred_element_type=f32) + bo              # (bg, L, D)

    # --- residual + norm1 (dropout = identity) -------------------------------
    x1n = _layernorm(x + new_x, g1, beta1)

    # --- FFN: conv1(k=1) -> relu -> conv2(k=1) -------------------------------
    h = jnp.einsum('bld,df->blf', x1n.astype(bf16), w1,
                   preferred_element_type=f32) + b1                  # (bg, L, d_ff)
    h = jnp.maximum(h, 0.0)
    y = jnp.einsum('blf,fd->bld', h.astype(bf16), w2,
                   preferred_element_type=f32) + b2                  # (bg, L, D)

    # --- residual + norm2 -----------------------------------------------------
    out_ref[...] = _layernorm(x1n + y, g2, beta2).astype(out_ref.dtype)


def _num_parallel_cores():
    """2 on v7x (2 TensorCores per chip), 1 on v5e/v6e/unknown."""
    try:
        kind = jax.devices()[0].device_kind.lower()
    except Exception:
        return 1
    return 2 if ("v7" in kind or "7x" in kind) else 1


def encoder_layer(x, packed):
    """x: (B, L, D) float32. Returns (out (B,L,D), attn (B,1,L,L), 0)."""
    B, L, D = x.shape

    G = _num_parallel_cores()
    if B % G != 0:
        G = 1                    # fall back to a single grid step
    Bg = B // G

    kernel = functools.partial(encoder_layer_kernel, bg=Bg, L=L, D=D)

    wqkv = packed["wqkv"]
    bqkv = packed["bqkv"]
    wo = packed["wo"]
    w1 = packed["w1"]
    b1 = packed["b1"]
    w2 = packed["w2"]
    vec6 = packed["vec6"]

    def inv2d(arr):              # grid-invariant 2-D parameter
        return pl.BlockSpec(arr.shape, lambda g: (0, 0))

    in_specs = [pl.BlockSpec((Bg, L, D), lambda g: (g, 0, 0)),
                inv2d(wqkv), inv2d(bqkv), inv2d(wo),
                inv2d(w1), inv2d(b1), inv2d(w2), inv2d(vec6)]

    out_shape = (jax.ShapeDtypeStruct((B, L, D), jnp.float32),
                 jax.ShapeDtypeStruct((B, L, L), jnp.float32))
    out_specs = (pl.BlockSpec((Bg, L, D), lambda g: (g, 0, 0)),
                 pl.BlockSpec((Bg, L, L), lambda g: (g, 0, 0)))

    out, attn = pl.pallas_call(
        kernel,
        grid=(G,),
        in_specs=in_specs,
        out_specs=out_specs,
        out_shape=out_shape,
        compiler_params=pltpu.CompilerParams(
            dimension_semantics=("parallel",)),
    )(x, wqkv, bqkv, wo, w1, b1, w2, vec6)

    # torch series attention is (B, H, L, L) with H = n_heads = 1
    return out, attn.reshape(B, 1, L, L), 0


def init_params(key, d_model, d_ff):
    ks = jax.random.split(key, 8)
    s = 0.02

    def w(k, shape):
        return jax.random.normal(k, shape, jnp.float32) * s

    params = {
        # attention projections (stored (in, out) so kernel does x @ W)
        "wq": w(ks[0], (d_model, d_model)), "bq": jnp.zeros((1, d_model), jnp.float32),
        "wk": w(ks[1], (d_model, d_model)), "bk": jnp.zeros((1, d_model), jnp.float32),
        "wv": w(ks[2], (d_model, d_model)), "bv": jnp.zeros((1, d_model), jnp.float32),
        "wo": w(ks[3], (d_model, d_model)), "bo": jnp.zeros((1, d_model), jnp.float32),
        # conv1 / conv2 with kernel_size=1 == pointwise linears
        "w1": w(ks[4], (d_model, d_ff)),    "b1": jnp.zeros((1, d_ff), jnp.float32),
        "w2": w(ks[5], (d_ff, d_model)),    "b2": jnp.zeros((1, d_model), jnp.float32),
        # LayerNorms
        "g1": jnp.ones((1, d_model), jnp.float32), "beta1": jnp.zeros((1, d_model), jnp.float32),
        "g2": jnp.ones((1, d_model), jnp.float32), "beta2": jnp.zeros((1, d_model), jnp.float32),
    }
    return params


def pack_params(params, d_model):
    """One-time parameter transform: fuse QKV, fold attention scale,
    cast matmul weights to bf16, stack the small (1, D) vectors."""
    scale = jnp.float32(1.0 / math.sqrt(d_model))
    wq_s = params["wq"] * scale
    bq_s = params["bq"] * scale
    wqkv = jnp.concatenate([wq_s, params["wk"], params["wv"]], axis=1)
    bqkv = jnp.concatenate([bq_s, params["bk"], params["bv"]], axis=1)
    vec6 = jnp.concatenate([params["bo"], params["b2"],
                            params["g1"], params["beta1"],
                            params["g2"], params["beta2"]], axis=0)
    return {
        "wqkv": wqkv.astype(jnp.bfloat16),
        "bqkv": bqkv.astype(jnp.float32),
        "wo": params["wo"].astype(jnp.bfloat16),
        "w1": params["w1"].astype(jnp.bfloat16),
        "b1": params["b1"].astype(jnp.float32),
        "w2": params["w2"].astype(jnp.bfloat16),
        "vec6": vec6.astype(jnp.float32),
    }


if __name__ == "__main__":
    B = 2
    win_size = 20          # L (= win_size in the module)
    d_model = 32
    d_ff = 4 * d_model     # default d_ff = 4 * d_model

    key = jax.random.PRNGKey(0)
    kx, kp = jax.random.split(key)
    x = jax.random.normal(kx, (B, win_size, d_model), jnp.float32)
    params = init_params(kp, d_model, d_ff)
    packed = pack_params(params, d_model)

    out, attn, zero = encoder_layer(x, packed)
    jax.block_until_ready((out, attn))

    assert out.shape == (B, win_size, d_model)
    assert attn.shape == (B, 1, win_size, win_size)
    assert zero == 0
    print("KERNEL_OK")
</pallas_src>

<mosaic_0001>
module attributes {stable_mosaic.version = 11 : i64} {
  func.func @encoder_layer_kernel(%arg0: i32, %arg1: memref<2x20x32xf32, #tpu.memory_space<vmem>>, %arg2: memref<32x96xbf16, #tpu.memory_space<vmem>>, %arg3: memref<1x96xf32, #tpu.memory_space<vmem>>, %arg4: memref<32x32xbf16, #tpu.memory_space<vmem>>, %arg5: memref<32x128xbf16, #tpu.memory_space<vmem>>, %arg6: memref<1x128xf32, #tpu.memory_space<vmem>>, %arg7: memref<128x32xbf16, #tpu.memory_space<vmem>>, %arg8: memref<6x32xf32, #tpu.memory_space<vmem>>, %arg9: memref<2x20x32xf32, #tpu.memory_space<vmem>>, %arg10: memref<2x20x20xf32, #tpu.memory_space<vmem>>) attributes {dimension_semantics = [#tpu.dimension_semantics<parallel>], iteration_bounds = array<i64: 1>, scalar_prefetch = 0 : i64, scratch_operands = 0 : i64, tpu.core_type = #tpu.core_type<tc>, window_params = [{transform_indices = @transform_0, window_bounds = array<i64: 2, 20, 32>}, {pipeline_mode = #tpu.pipeline_mode<synchronous>, transform_indices = @transform_1, window_bounds = array<i64: 32, 96>}, {pipeline_mode = #tpu.pipeline_mode<synchronous>, transform_indices = @transform_2, window_bounds = array<i64: 1, 96>}, {pipeline_mode = #tpu.pipeline_mode<synchronous>, transform_indices = @transform_3, window_bounds = array<i64: 32, 32>}, {pipeline_mode = #tpu.pipeline_mode<synchronous>, transform_indices = @transform_4, window_bounds = array<i64: 32, 128>}, {pipeline_mode = #tpu.pipeline_mode<synchronous>, transform_indices = @transform_5, window_bounds = array<i64: 1, 128>}, {pipeline_mode = #tpu.pipeline_mode<synchronous>, transform_indices = @transform_6, window_bounds = array<i64: 128, 32>}, {pipeline_mode = #tpu.pipeline_mode<synchronous>, transform_indices = @transform_7, window_bounds = array<i64: 6, 32>}, {transform_indices = @transform_8, window_bounds = array<i64: 2, 20, 32>}, {transform_indices = @transform_9, window_bounds = array<i64: 2, 20, 20>}]} {
    %c0 = arith.constant 0 : index
    %c0_0 = arith.constant 0 : index
    %0 = vector.load %arg8[%c0, %c0_0] : memref<6x32xf32, #tpu.memory_space<vmem>>, vector<1x32xf32>
    %c1 = arith.constant 1 : index
    %c0_1 = arith.constant 0 : index
    %1 = vector.load %arg8[%c1, %c0_1] : memref<6x32xf32, #tpu.memory_space<vmem>>, vector<1x32xf32>
    %c2 = arith.constant 2 : index
    %c0_2 = arith.constant 0 : index
    %2 = vector.load %arg8[%c2, %c0_2] : memref<6x32xf32, #tpu.memory_space<vmem>>, vector<1x32xf32>
    %c3 = arith.constant 3 : index
    %c0_3 = arith.constant 0 : index
    %3 = vector.load %arg8[%c3, %c0_3] : memref<6x32xf32, #tpu.memory_space<vmem>>, vector<1x32xf32>
    %c4 = arith.constant 4 : index
    %c0_4 = arith.constant 0 : index
    %4 = vector.load %arg8[%c4, %c0_4] : memref<6x32xf32, #tpu.memory_space<vmem>>, vector<1x32xf32>
    %c5 = arith.constant 5 : index
    %c0_5 = arith.constant 0 : index
    %5 = vector.load %arg8[%c5, %c0_5] : memref<6x32xf32, #tpu.memory_space<vmem>>, vector<1x32xf32>
    %c0_6 = arith.constant 0 : index
    %c0_7 = arith.constant 0 : index
    %6 = vector.load %arg2[%c0_6, %c0_7] : memref<32x96xbf16, #tpu.memory_space<vmem>>, vector<32x96xbf16>
    %c0_8 = arith.constant 0 : index
    %c0_9 = arith.constant 0 : index
    %7 = vector.load %arg4[%c0_8, %c0_9] : memref<32x32xbf16, #tpu.memory_space<vmem>>, vector<32x32xbf16>
    %c0_10 = arith.constant 0 : index
    %c0_11 = arith.constant 0 : index
    %8 = vector.load %arg5[%c0_10, %c0_11] : memref<32x128xbf16, #tpu.memory_space<vmem>>, vector<32x128xbf16>
    %c0_12 = arith.constant 0 : index
    %c0_13 = arith.constant 0 : index
    %9 = vector.load %arg7[%c0_12, %c0_13] : memref<128x32xbf16, #tpu.memory_space<vmem>>, vector<128x32xbf16>
    %c0_14 = arith.constant 0 : index
    %c0_15 = arith.constant 0 : index
    %10 = vector.load %arg3[%c0_14, %c0_15] : memref<1x96xf32, #tpu.memory_space<vmem>>, vector<1x96xf32>
    %c0_16 = arith.constant 0 : index
    %c0_17 = arith.constant 0 : index
    %11 = vector.load %arg6[%c0_16, %c0_17] : memref<1x128xf32, #tpu.memory_space<vmem>>, vector<1x128xf32>
    %c0_18 = arith.constant 0 : index
    %c0_19 = arith.constant 0 : index
    %c0_20 = arith.constant 0 : index
    %12 = vector.load %arg1[%c0_18, %c0_19, %c0_20] : memref<2x20x32xf32, #tpu.memory_space<vmem>>, vector<2x20x32xf32>
    %13 = arith.truncf %12 : vector<2x20x32xf32> to vector<2x20x32xbf16>
    "tpu.trace_start"() <{level = 10 : i32, message = "bld,df->blf"}> : () -> ()
    %cst = arith.constant dense<0.000000e+00> : vector<2x20x96xf32>
    %14 = tpu.matmul %13, %6, %cst {dimension_numbers = #tpu.dot_dimension_numbers<[2], [0], [0, 1], [1], [0, 0, 0, 1, 1, 1], [], []>} : vector<2x20x32xbf16>, vector<32x96xbf16>, vector<2x20x96xf32> -> vector<2x20x96xf32>
    "tpu.trace_stop"() : () -> ()
    %15 = vector.shape_cast %10 : vector<1x96xf32> to vector<1x1x96xf32>
    %16 = vector.broadcast %15 : vector<1x1x96xf32> to vector<2x20x96xf32>
    %17 = arith.addf %14, %16 : vector<2x20x96xf32>
    %18 = vector.extract_strided_slice %17 {offsets = [0, 0, 0], sizes = [2, 20, 32], strides = [1, 1, 1]} : vector<2x20x96xf32> to vector<2x20x32xf32>
    %19 = vector.extract_strided_slice %17 {offsets = [0, 0, 32], sizes = [2, 20, 32], strides = [1, 1, 1]} : vector<2x20x96xf32> to vector<2x20x32xf32>
    %20 = vector.extract_strided_slice %17 {offsets = [0, 0, 64], sizes = [2, 20, 32], strides = [1, 1, 1]} : vector<2x20x96xf32> to vector<2x20x32xf32>
    %21 = arith.truncf %18 : vector<2x20x32xf32> to vector<2x20x32xbf16>
    %22 = arith.truncf %19 : vector<2x20x32xf32> to vector<2x20x32xbf16>
    "tpu.trace_start"() <{level = 10 : i32, message = "bqd,bkd->bqk"}> : () -> ()
    %cst_21 = arith.constant dense<0.000000e+00> : vector<2x20x20xf32>
    %23 = tpu.matmul %21, %22, %cst_21 {dimension_numbers = #tpu.dot_dimension_numbers<[2], [2], [1], [1], [0, 0, 0, 1, 1, 1], [0], [0]>} : vector<2x20x32xbf16>, vector<2x20x32xbf16>, vector<2x20x20xf32> -> vector<2x20x20xf32>
    "tpu.trace_stop"() : () -> ()
    %cst_22 = arith.constant dense<0xFF800000> : vector<2x20xf32>
    %24 = vector.multi_reduction <maximumf>, %23, %cst_22 [2] : vector<2x20x20xf32> to vector<2x20xf32>
    %25 = vector.shape_cast %24 : vector<2x20xf32> to vector<2x20x1xf32>
    %26 = vector.broadcast %25 : vector<2x20x1xf32> to vector<2x20x20xf32>
    %27 = arith.subf %23, %26 : vector<2x20x20xf32>
    %28 = math.exp %27 : vector<2x20x20xf32>
    %cst_23 = arith.constant dense<0.000000e+00> : vector<2x20xf32>
    %29 = vector.multi_reduction <add>, %28, %cst_23 [2] : vector<2x20x20xf32> to vector<2x20xf32>
    %30 = vector.shape_cast %29 : vector<2x20xf32> to vector<2x20x1xf32>
    %31 = tpu.reciprocal %30 {approx = true} : vector<2x20x1xf32> -> vector<2x20x1xf32>
    %32 = vector.broadcast %31 : vector<2x20x1xf32> to vector<2x20x20xf32>
    %33 = arith.mulf %28, %32 : vector<2x20x20xf32>
    %c0_24 = arith.constant 0 : index
    %c0_25 = arith.constant 0 : index
    %c0_26 = arith.constant 0 : index
    %34 = vector.load %arg10[%c0_24, %c0_25, %c0_26] : memref<2x20x20xf32, #tpu.memory_space<vmem>>, vector<2x20x20xf32>
    tpu.vector_store %arg10[%c0_24, %c0_25, %c0_26], %33 {strides = array<i32>} : memref<2x20x20xf32, #tpu.memory_space<vmem>>, vector<2x20x20xf32>,
    %35 = arith.truncf %33 : vector<2x20x20xf32> to vector<2x20x20xbf16>
    %36 = arith.truncf %20 : vector<2x20x32xf32> to vector<2x20x32xbf16>
    "tpu.trace_start"() <{level = 10 : i32, message = "bqk,bkd->bqd"}> : () -> ()
    %cst_27 = arith.constant dense<0.000000e+00> : vector<2x20x32xf32>
    %37 = tpu.matmul %35, %36, %cst_27 {dimension_numbers = #tpu.dot_dimension_numbers<[2], [1], [1], [2], [0, 0, 0, 1, 1, 2], [0], [0]>} : vector<2x20x20xbf16>, vector<2x20x32xbf16>, vector<2x20x32xf32> -> vector<2x20x32xf32>
    "tpu.trace_stop"() : () -> ()
    %38 = arith.truncf %37 : vector<2x20x32xf32> to vector<2x20x32xbf16>
    "tpu.trace_start"() <{level = 10 : i32, message = "bld,df->blf"}> : () -> ()
    %cst_28 = arith.constant dense<0.000000e+00> : vector<2x20x32xf32>
    %39 = tpu.matmul %38, %7, %cst_28 {dimension_numbers = #tpu.dot_dimension_numbers<[2], [0], [0, 1], [1], [0, 0, 0, 1, 1, 1], [], []>} : vector<2x20x32xbf16>, vector<32x32xbf16>, vector<2x20x32xf32> -> vector<2x20x32xf32>
    "tpu.trace_stop"() : () -> ()
    %40 = vector.shape_cast %0 : vector<1x32xf32> to vector<1x1x32xf32>
    %41 = vector.broadcast %40 : vector<1x1x32xf32> to vector<2x20x32xf32>
    %42 = arith.addf %39, %41 : vector<2x20x32xf32>
    %43 = arith.addf %12, %42 : vector<2x20x32xf32>
    %cst_29 = arith.constant dense<0.000000e+00> : vector<2x20xf32>
    %44 = vector.multi_reduction <add>, %43, %cst_29 [2] : vector<2x20x32xf32> to vector<2x20xf32>
    %45 = vector.shape_cast %44 : vector<2x20xf32> to vector<2x20x1xf32>
    %cst_30 = arith.constant 3.200000e+01 : f32
    %46 = vector.broadcast %cst_30 : f32 to vector<2x20x1xf32>
    %47 = arith.divf %45, %46 : vector<2x20x1xf32>
    %48 = vector.broadcast %47 : vector<2x20x1xf32> to vector<2x20x32xf32>
    %49 = arith.subf %43, %48 : vector<2x20x32xf32>
    %50 = arith.mulf %49, %49 : vector<2x20x32xf32>
    %cst_31 = arith.constant dense<0.000000e+00> : vector<2x20xf32>
    %51 = vector.multi_reduction <add>, %50, %cst_31 [2] : vector<2x20x32xf32> to vector<2x20xf32>
    %52 = vector.shape_cast %51 : vector<2x20xf32> to vector<2x20x1xf32>
    %cst_32 = arith.constant 3.200000e+01 : f32
    %53 = vector.broadcast %cst_32 : f32 to vector<2x20x1xf32>
    %54 = arith.divf %52, %53 : vector<2x20x1xf32>
    %55 = vector.broadcast %47 : vector<2x20x1xf32> to vector<2x20x32xf32>
    %56 = arith.subf %43, %55 : vector<2x20x32xf32>
    %cst_33 = arith.constant 9.99999974E-6 : f32
    %57 = vector.broadcast %cst_33 : f32 to vector<2x20x1xf32>
    %58 = arith.addf %54, %57 : vector<2x20x1xf32>
    %59 = math.rsqrt %58 : vector<2x20x1xf32>
    %60 = vector.broadcast %59 : vector<2x20x1xf32> to vector<2x20x32xf32>
    %61 = arith.mulf %56, %60 : vector<2x20x32xf32>
    %62 = vector.shape_cast %2 : vector<1x32xf32> to vector<1x1x32xf32>
    %63 = vector.broadcast %62 : vector<1x1x32xf32> to vector<2x20x32xf32>
    %64 = arith.mulf %61, %63 : vector<2x20x32xf32>
    %65 = vector.shape_cast %3 : vector<1x32xf32> to vector<1x1x32xf32>
    %66 = vector.broadcast %65 : vector<1x1x32xf32> to vector<2x20x32xf32>
    %67 = arith.addf %64, %66 : vector<2x20x32xf32>
    %68 = arith.truncf %67 : vector<2x20x32xf32> to vector<2x20x32xbf16>
    "tpu.trace_start"() <{level = 10 : i32, message = "bld,df->blf"}> : () -> ()
    %cst_34 = arith.constant dense<0.000000e+00> : vector<2x20x128xf32>
    %69 = tpu.matmul %68, %8, %cst_34 {dimension_numbers = #tpu.dot_dimension_numbers<[2], [0], [0, 1], [1], [0, 0, 0, 1, 1, 1], [], []>} : vector<2x20x32xbf16>, vector<32x128xbf16>, vector<2x20x128xf32> -> vector<2x20x128xf32>
    "tpu.trace_stop"() : () -> ()
    %70 = vector.shape_cast %11 : vector<1x128xf32> to vector<1x1x128xf32>
    %71 = vector.broadcast %70 : vector<1x1x128xf32> to vector<2x20x128xf32>
    %72 = arith.addf %69, %71 : vector<2x20x128xf32>
    %cst_35 = arith.constant 0.000000e+00 : f32
    %73 = vector.broadcast %cst_35 : f32 to vector<2x20x128xf32>
    %74 = arith.maximumf %72, %73 : vector<2x20x128xf32>
    %75 = arith.truncf %74 : vector<2x20x128xf32> to vector<2x20x128xbf16>
    "tpu.trace_start"() <{level = 10 : i32, message = "blf,fd->bld"}> : () -> ()
    %cst_36 = arith.constant dense<0.000000e+00> : vector<2x20x32xf32>
    %76 = tpu.matmul %75, %9, %cst_36 {dimension_numbers = #tpu.dot_dimension_numbers<[2], [0], [0, 1], [1], [0, 0, 0, 1, 1, 1], [], []>} : vector<2x20x128xbf16>, vector<128x32xbf16>, vector<2x20x32xf32> -> vector<2x20x32xf32>
    "tpu.trace_stop"() : () -> ()
    %77 = vector.shape_cast %1 : vector<1x32xf32> to vector<1x1x32xf32>
    %78 = vector.broadcast %77 : vector<1x1x32xf32> to vector<2x20x32xf32>
    %79 = arith.addf %76, %78 : vector<2x20x32xf32>
    %80 = arith.addf %67, %79 : vector<2x20x32xf32>
    %cst_37 = arith.constant dense<0.000000e+00> : vector<2x20xf32>
    %81 = vector.multi_reduction <add>, %80, %cst_37 [2] : vector<2x20x32xf32> to vector<2x20xf32>
    %82 = vector.shape_cast %81 : vector<2x20xf32> to vector<2x20x1xf32>
    %cst_38 = arith.constant 3.200000e+01 : f32
    %83 = vector.broadcast %cst_38 : f32 to vector<2x20x1xf32>
    %84 = arith.divf %82, %83 : vector<2x20x1xf32>
    %85 = vector.broadcast %84 : vector<2x20x1xf32> to vector<2x20x32xf32>
    %86 = arith.subf %80, %85 : vector<2x20x32xf32>
    %87 = arith.mulf %86, %86 : vector<2x20x32xf32>
    %cst_39 = arith.constant dense<0.000000e+00> : vector<2x20xf32>
    %88 = vector.multi_reduction <add>, %87, %cst_39 [2] : vector<2x20x32xf32> to vector<2x20xf32>
    %89 = vector.shape_cast %88 : vector<2x20xf32> to vector<2x20x1xf32>
    %cst_40 = arith.constant 3.200000e+01 : f32
    %90 = vector.broadcast %cst_40 : f32 to vector<2x20x1xf32>
    %91 = arith.divf %89, %90 : vector<2x20x1xf32>
    %92 = vector.broadcast %84 : vector<2x20x1xf32> to vector<2x20x32xf32>
    %93 = arith.subf %80, %92 : vector<2x20x32xf32>
    %cst_41 = arith.constant 9.99999974E-6 : f32
    %94 = vector.broadcast %cst_41 : f32 to vector<2x20x1xf32>
    %95 = arith.addf %91, %94 : vector<2x20x1xf32>
    %96 = math.rsqrt %95 : vector<2x20x1xf32>
    %97 = vector.broadcast %96 : vector<2x20x1xf32> to vector<2x20x32xf32>
    %98 = arith.mulf %93, %97 : vector<2x20x32xf32>
    %99 = vector.shape_cast %4 : vector<1x32xf32> to vector<1x1x32xf32>
    %100 = vector.broadcast %99 : vector<1x1x32xf32> to vector<2x20x32xf32>
    %101 = arith.mulf %98, %100 : vector<2x20x32xf32>
    %102 = vector.shape_cast %5 : vector<1x32xf32> to vector<1x1x32xf32>
    %103 = vector.broadcast %102 : vector<1x1x32xf32> to vector<2x20x32xf32>
    %104 = arith.addf %101, %103 : vector<2x20x32xf32>
    %c0_42 = arith.constant 0 : index
    %c0_43 = arith.constant 0 : index
    %c0_44 = arith.constant 0 : index
    %105 = vector.load %arg9[%c0_42, %c0_43, %c0_44] : memref<2x20x32xf32, #tpu.memory_space<vmem>>, vector<2x20x32xf32>
    tpu.vector_store %arg9[%c0_42, %c0_43, %c0_44], %104 {strides = array<i32>} : memref<2x20x32xf32, #tpu.memory_space<vmem>>, vector<2x20x32xf32>,
    return
  }
  func.func @transform_0(%arg0: i32) -> (i32, i32, i32) {
    %c0_i32 = arith.constant 0 : i32
    %c0_i32_0 = arith.constant 0 : i32
    %c0_i32_1 = arith.constant 0 : i32
    return %arg0, %c0_i32, %c0_i32_0 : i32, i32, i32
  }
  func.func @transform_1(%arg0: i32) -> (i32, i32) {
    %c0_i32 = arith.constant 0 : i32
    %c0_i32_0 = arith.constant 0 : i32
    %c0_i32_1 = arith.constant 0 : i32
    return %c0_i32, %c0_i32_0 : i32, i32
  }
  func.func @transform_2(%arg0: i32) -> (i32, i32) {
    %c0_i32 = arith.constant 0 : i32
    %c0_i32_0 = arith.constant 0 : i32
    %c0_i32_1 = arith.constant 0 : i32
    return %c0_i32, %c0_i32_0 : i32, i32
  }
  func.func @transform_3(%arg0: i32) -> (i32, i32) {
    %c0_i32 = arith.constant 0 : i32
    %c0_i32_0 = arith.constant 0 : i32
    %c0_i32_1 = arith.constant 0 : i32
    return %c0_i32, %c0_i32_0 : i32, i32
  }
  func.func @transform_4(%arg0: i32) -> (i32, i32) {
    %c0_i32 = arith.constant 0 : i32
    %c0_i32_0 = arith.constant 0 : i32
    %c0_i32_1 = arith.constant 0 : i32
    return %c0_i32, %c0_i32_0 : i32, i32
  }
  func.func @transform_5(%arg0: i32) -> (i32, i32) {
    %c0_i32 = arith.constant 0 : i32
    %c0_i32_0 = arith.constant 0 : i32
    %c0_i32_1 = arith.constant 0 : i32
    return %c0_i32, %c0_i32_0 : i32, i32
  }
  func.func @transform_6(%arg0: i32) -> (i32, i32) {
    %c0_i32 = arith.constant 0 : i32
    %c0_i32_0 = arith.constant 0 : i32
    %c0_i32_1 = arith.constant 0 : i32
    return %c0_i32, %c0_i32_0 : i32, i32
  }
  func.func @transform_7(%arg0: i32) -> (i32, i32) {
    %c0_i32 = arith.constant 0 : i32
    %c0_i32_0 = arith.constant 0 : i32
    %c0_i32_1 = arith.constant 0 : i32
    return %c0_i32, %c0_i32_0 : i32, i32
  }
  func.func @transform_8(%arg0: i32) -> (i32, i32, i32) {
    %c0_i32 = arith.constant 0 : i32
    %c0_i32_0 = arith.constant 0 : i32
    %c0_i32_1 = arith.constant 0 : i32
    return %arg0, %c0_i32, %c0_i32_0 : i32, i32, i32
  }
  func.func @transform_9(%arg0: i32) -> (i32, i32, i32) {
    %c0_i32 = arith.constant 0 : i32
    %c0_i32_0 = arith.constant 0 : i32
    %c0_i32_1 = arith.constant 0 : i32
    return %arg0, %c0_i32, %c0_i32_0 : i32, i32, i32
  }
}

</mosaic_0001>

<bundles_post_ra>
// kernel: tpu_custom_call.1
= control target key start
LH: loop header
LB: loop body
LE: loop exit
PB: predicated region body
PF: predicated region fallthrough
CT: control target
= control target key end

     0   :  { %v91_v0 = vlaneseq  ;;  %v1784_v1 = vmov 0.0   ;;  %vm1785_vm0 = vmmov 0   ;;  %v1786_v3 = vmov 1983009808   ;;  %s1788_s25 = smov 64   ;;  %s2224_s1 = inlined_call_operand.vmem [shape: bf16[32,96], index: 1, kind: input, shape index: {}]   ;;  %s2225_s0 = inlined_call_operand.vmem [shape: f32[2,20,32], index: 0, kind: input, shape index: {}]   ;;  %s2226_s2 = inlined_call_operand.vmem [shape: f32[1,96], index: 2, kind: input, shape index: {}]   ;;  %s2227_s9 = inlined_call_operand.vmem [shape: f32[2,20,20], index: 9, kind: output, shape index: {1}]   ;;  %s2228_s3 = inlined_call_operand.vmem [shape: bf16[32,32], index: 3, kind: input, shape index: {}]   ;;  %s2229_s7 = inlined_call_operand.vmem [shape: f32[6,32], index: 7, kind: input, shape index: {}]   ;;  %s2230_s4 = inlined_call_operand.vmem [shape: bf16[32,128], index: 4, kind: input, shape index: {}]   ;;  %s2231_s6 = inlined_call_operand.vmem [shape: bf16[128,32], index: 6, kind: input, shape index: {}]   ;;  %s2232_s5 = inlined_call_operand.vmem [shape: f32[1,128], index: 5, kind: input, shape index: {}]   ;;  %s2233_s8 = inlined_call_operand.vmem [shape: f32[2,20,32], index: 8, kind: output, shape index: {0}]  }
   0x1   :  { %1603 = vmatprep.subr.bf16.mxu1 %v1784_v1  ;;  %v1722_v2 = vld [vmem:[%s2224_s1] sm:$0xff]   ;;  %1607 = vmatprep.mubr.msk.bf16.mxu1 %vm1785_vm0, %v1784_v1  ;;  %v89_v4 = vunpack.c.l.s4 %v1786_v3  ;;  %v1723_v5 = vld [vmem:[%s2224_s1 + $0x8] sm:$0xff]   ;;  %v1861_v10 = vld [vmem:[%s2225_s0 + $0x10] sm:$0xf]  ;;  %vm196_vm1 = vcmask 261120   ;;  %vm417_vm2 = vcmask 162816  }
   0x2   :  { %v92_v6 = vshrl.u32 %v91_v0, 7  ;;  %1604 = vmatpush3.bf16.msra.mxu1 %v1722_v2  ;;  %v1851_v7 = vld [vmem:[%s2225_s0] sm:$0xff]  ;;  %v1856_v8 = vld [vmem:[%s2225_s0 + $0x8] sm:$0xff]  ;;  %v1871_v13 = vld [vmem:[%s2225_s0 + $0x18] sm:$0xff]  ;;  %v75_v15 = vpack.c.bf16 %v1861_v10, %v1861_v10  ;;  %vm424_vm3 = vcmask 158720   ;;  %vm506_vm4 = vcmask 1041408  }
   0x3   :  { %v90_v9 = vunpack.c.0.s8 %v89_v4  ;;  %1605 = vmatprep.subr.bf16.mxu1 %v1784_v1  ;;  %v74_v11 = vpack.c.bf16 %v1856_v8, %v1851_v7  ;;  %v1515_v12 = vpack.c.bf16 %v1856_v8, %v1856_v8  ;;  %v1876_v14 = vld [vmem:[%s2225_s0 + $0x20] sm:$0xff]  ;;  %v1896_v33 = vld [vmem:[%s2225_s0 + $0x28] sm:$0xf]  ;;  %vm838_vm5 = vcmask 257024  }
   0x4   :  { %v76_v17 = vpack.c.bf16 %v1876_v14, %v1871_v13  ;;  %v1516_v18 = vpack.c.bf16 %v1876_v14, %v1876_v14  ;;  %v77_v37 = vpack.c.bf16 %v1896_v33, %v1896_v33  ;;  %v1514_v43 = vld [vmem:[%s2226_s2] ss:$0 sm:$0xff]  ;;  %s1787_s2 = smov 96  }
   0x5   :  { %v1880_v16 = vsub.s32 %v90_v9, %v92_v6  ;;  %v135_v44 = vcombine.high %v1514_v43, %v1514_v43  ;;  %v191_v54 = vcombine.low %v1514_v43, %v1514_v43 }
   0x6   :  { %1606 = vmatpush3.bf16.msra.mxu1 %v1723_v5 }
   0x7   :  { %v94_v19 = vrot.slane %v74_v11, %v1880_v16  ;;  %v101_v20 = vrot.slane %v1515_v12, %v1880_v16  ;;  %v118_v21 = vrot.slane %v76_v17, %v1880_v16  ;;  %v110_v22 = vrot.slane %v75_v15, %v1880_v16 }
   0x8   :  { %v125_v25 = vrot.slane %v1516_v18, %v1880_v16  ;;  %v134_v40 = vrot.slane %v77_v37, %v1880_v16  ;;  %v190_v45 = vcombine.low %v1514_v43, %v135_v44  ;;  %v192_v57 = vcombine.low %v135_v44, %v1514_v43 }
   0x9   :  { %v102_v23 = vcombine.high %v94_v19, %v94_v19  ;;  %v103_v24 = vcombine.high %v101_v20, %v101_v20  ;;  %v126_v26 = vcombine.high %v118_v21, %v118_v21  ;;  %v153_v31 = vcombine.low %v110_v22, %v118_v21 }
   0xa   :  { %v127_v39 = vcombine.high %v125_v25, %v125_v25 }
   0xb   :  { %v136_v27 = vcombine.low %v94_v19, %v102_v23  ;;  %v137_v28 = vcombine.low %v101_v20, %v103_v24  ;;  %v154_v32 = vcombine.low %v126_v26, %v125_v25  ;;  %v161_v35 = vrot.slane %v153_v31, %v1880_v16 }
   0xc   :  { %v170_v41 = vcombine.low %v127_v39, %v134_v40 }
   0xd   :  { %v144_v29 = vrot.slane %v136_v27, %v1880_v16  ;;  %v151_v30 = vrot.slane %v137_v28, %v1880_v16  ;;  %v168_v36 = vrot.slane %v154_v32, %v1880_v16 }
   0xe   :  { %v177_v42 = vrot.slane %v170_v41, %v1880_v16 }
   0xf   :  { %v152_v34 = vcombine.low %v144_v29, %v151_v30  ;;  %v169_v38 = vcombine.low %v161_v35, %v168_v36 }
  0x11   :  { %1608 = vmatmul.mubr.msk.bf16.vlgmr.msra.gmra.mrb[0].mxu1 %vm196_vm1, %v152_v34 }
  0x12   :  { %1611 = vmatprep.mubr.msk.bf16.mxu1 %vm1785_vm0, %v1784_v1 }
  0x19   :  { %1612 = vmatmul.mubr.msk.bf16.gmra.mrb[4].mxu1 %vm196_vm1, %v169_v38 }
  0x1a   :  { %1615 = vmatprep.mubr.msk.bf16.mxu1 %vm1785_vm0, %v1784_v1 }
  0x21   :  { %1616 = vmatmul.mubr.msk.bf16.gmra.mrb[8].mxu1 %vm196_vm1, %v177_v42 }
  0xe4   :  { %v240_v46 = vpop.f32.mrb[0].mxu1 }
  0xe5   :  { %v241_v47 = vadd.f32 %v240_v46, %v190_v45  ;;  %v1609_v48 = vpop.f32.mrb[1].mxu1 }
  0xe6   :  { %v243_v49 = vpop.f32.mrb[2].mxu1 }
  0xe7   :  { %v267_v50 = vcombine.high %v241_v47, %v241_v47  ;;  %v244_v51 = vadd.f32 %v243_v49, %v190_v45  ;;  %v1610_v52 = vpop.f32.mrb[3].mxu1 }
  0xe9   :  { %v268_v53 = vcombine.high %v244_v51, %v244_v51  ;;  %v273_v55 = vcombine.low %v241_v47, %v267_v50 }
  0xeb   :  { %v274_v56 = vcombine.low %v244_v51, %v268_v53 }
  0xec   :  { %v248_v58 = vpop.f32.mrb[4].mxu1 }
  0xed   :  { %v1914_v59 = vpack.c.bf16 %v274_v56, %v273_v55  ;;  %v249_v60 = vadd.f32 %v248_v58, %v191_v54  ;;  %v1613_v61 = vpop.f32.mrb[5].mxu1 }
  0xee   :  { %v251_v62 = vpop.f32.mrb[6].mxu1 }
  0xef   :  { %287 = vrot.lane.b32.xlu0 %v1914_v59, %s1787_s2  ;;  %1623 = vmatprep.mubr.msk.bf16.mxu1 %vm196_vm1, %v1914_v59  ;;  %v269_v63 = vcombine.high %v249_v60, %v249_v60  ;;  %v1919_v0 = vpack.c.bf16 %v249_v60, %v249_v60  ;;  %v252_v2 = vadd.f32 %v251_v62, %v192_v57  ;;  %v1614_v3 = vpop.f32.mrb[7].mxu1 }
  0xf1   :  { %v275_v4 = vcombine.low %v269_v63, %v252_v2  ;;  %v270_v5 = vcombine.high %v252_v2, %v252_v2 }
  0xf3   :  { %289 = vrot.lane.b32.xlu0 %v1919_v0, %s1787_s2 }
  0xf4   :  { %v256_v6 = vpop.f32.mrb[8].mxu1 }
  0xf5   :  { %v257_v9 = vadd.f32 %v256_v6, %v192_v57  ;;  %v1617_v11 = vpop.f32.mrb[9].mxu1 }
  0xf6   :  { %v259_v12 = vpop.f32.mrb[10].mxu1 }
  0xf7   :  { %v271_v15 = vcombine.high %v257_v9, %v257_v9  ;;  %v276_v17 = vcombine.low %v270_v5, %v257_v9  ;;  %v1618_v18 = vpop.f32.mrb[11].mxu1 }
  0xf9   :  { %v1922_v19 = vpack.c.bf16 %v276_v17, %v275_v4  ;;  %v1924_v20 = vpack.c.bf16 %v271_v15, %v271_v15 }
  0xfb   :  { %353 = vrot.lane.b32.xlu1 %v1922_v19, %s1787_s2  ;;  %1631 = vmatprep.mubr.msk.bf16.mxu0 %vm196_vm1, %v1922_v19 }
  0xff   :  { %355 = vrot.lane.b32.xlu1 %v1924_v20, %s1787_s2 }
 0x161   :  { %v288_v21 = vpop.permute.xlu0 %287 }
 0x162   :  { %v298_v22 = vsel %vm196_vm1, %v288_v21, 0  ;;  %1711 = vmatprep.subr.msk.bf16.mxu1 %vm196_vm1, %v288_v21 }
 0x163   :  { %1620 = vmatpush3.bf16.xpose.msra.mxu1 %v298_v22 }
 0x165   :  { %v290_v23 = vpop.permute.xlu0 %289 }
 0x166   :  { %1712 = vmatprep.subr.msk.bf16.mxu1 %vm196_vm1, %v290_v23  ;;  %v301_v24 = vsel %vm196_vm1, %v290_v23, 0 }
 0x16b   :  { %1622 = vmatpush3.bf16.xpose.msra.mxu1 %v301_v24 }
 0x16d   :  { %v354_v25 = vpop.permute.xlu1 %353 }
 0x16e   :  { %1713 = vmatprep.subr.msk.bf16.mxu0 %vm196_vm1, %v354_v25  ;;  %v364_v26 = vsel %vm196_vm1, %v354_v25, 0 }
 0x16f   :  { %1628 = vmatpush3.bf16.xpose.msra.mxu0 %v364_v26 }
 0x171   :  { %v356_v27 = vpop.permute.xlu1 %355 }
 0x172   :  { %1624 = vmatmul.mubr.msk.bf16.vlgmr.msra.gmra.mrb[12].mxu1 %vm196_vm1, %v1919_v0  ;;  %1714 = vmatprep.subr.msk.bf16.mxu0 %vm196_vm1, %v356_v27  ;;  %v367_v28 = vsel %vm196_vm1, %v356_v27, 0 }
 0x177   :  { %1630 = vmatpush3.bf16.xpose.msra.mxu0 %v367_v28 }
 0x178   :  { %1651 = vmatprep.subr.bf16.mxu0 %v1784_v1 }
 0x17e   :  { %1632 = vmatmul.mubr.msk.bf16.vlgmr.msra.gmra.mrb[0].mxu0 %vm196_vm1, %v1924_v20 }
 0x17f   :  { %1655 = vmatprep.mubr.msk.bf16.mxu0 %vm1785_vm0, %v1784_v1 }
 0x245   :  { %v1625_v29 = vpop.f32.mrb[12].mxu1 }
 0x246   :  { %v337_v30 = vpop.f32.mrb[13].mxu1  ;;  %v425_v36 = vsel %vm424_vm3, %v1625_v29, -inf }
 0x247   :  { %v1626_v31 = vpop.f32.mrb[14].mxu1  ;;  %v418_v32 = vsel %vm417_vm2, %v337_v30, -inf }
 0x248   :  { %419 = vmax.xlane.f32.xlu0 %v418_v32  ;;  %v340_v34 = vpop.f32.mrb[15].mxu1 }
 0x249   :  { %v421_v35 = vsel %vm417_vm2, %v340_v34, -inf }
 0x24a   :  { %422 = vmax.xlane.f32.xlu1 %v421_v35 }
 0x24c   :  { %426 = vmax.xlane.f32.xlu0 %v425_v36 }
 0x251   :  { %v1633_v37 = vpop.f32.mrb[0].mxu0 }
 0x252   :  { %v403_v38 = vpop.f32.mrb[1].mxu0  ;;  %v434_v43 = vsel %vm424_vm3, %v1633_v37, -inf }
 0x253   :  { %v1634_v39 = vpop.f32.mrb[2].mxu0  ;;  %v428_v40 = vsel %vm417_vm2, %v403_v38, -inf }
 0x254   :  { %v406_v41 = vpop.f32.mrb[3].mxu0  ;;  %429 = vmax.xlane.f32.xlu0 %v428_v40 }
 0x255   :  { %v431_v42 = vsel %vm417_vm2, %v406_v41, -inf }
 0x256   :  { %432 = vmax.xlane.f32.xlu1 %v431_v42 }
 0x258   :  { %435 = vmax.xlane.f32.xlu0 %v434_v43 }
 0x267   :  { %495 = vrot.lane.b32.xlu1 %v1914_v59, %s1788_s25 }
 0x2d5   :  { %v420_v44 = vpop.xlane.xlu0 %419 }
 0x2d6   :  { %v437_v46 = vsub.f32 %v337_v30, %v420_v44 }
 0x2d7   :  { %v423_v45 = vpop.xlane.xlu1 %422 }
 0x2d8   :  { %v438_v47 = vsub.f32 %v340_v34, %v423_v45  ;;  %v443_v51 = vmul.f32 1.442695, %v437_v46  ;;  %v1724_v46 = vld [vmem:[%s2228_s3] sm:$0xff]  }
 0x2d9   :  { %v427_v48 = vpop.xlane.xlu0 %426  ;;  %1652 = vmatpush3.bf16.msra.mxu0 %v1724_v46 }
 0x2da   :  { %v445_v49 = vmul.f32 1.442695, %v438_v47  ;;  %v439_v50 = vsub.f32 %v1625_v29, %v427_v48  ;;  %1653 = vmatprep.subr.bf16.mxu0 %v1784_v1  ;;  %v1725_v47 = vld [vmem:[%s2228_s3 + $0x8] sm:$0xff]  }
 0x2dc   :  { %1736 = vpow2.f32 %v445_v49  ;;  %v447_v52 = vmul.f32 1.442695, %v439_v50 }
 0x2dd   :  { %1654 = vmatpush3.bf16.msra.mxu0 %v1725_v47 }
 0x2de   :  { %1738 = vpow2.f32 %v447_v52  ;;  %1683 = vmatprep.subr.bf16.mxu0 %v1784_v1 }
 0x2df   :  { %1740 = vpow2.f32 %v443_v51 }
 0x2e1   :  { %v430_v53 = vpop.xlane.xlu0 %429 }
 0x2e2   :  { %v440_v55 = vsub.f32 %v403_v38, %v430_v53 }
 0x2e3   :  { %v433_v54 = vpop.xlane.xlu1 %432 }
 0x2e4   :  { %v449_v62 = vmul.f32 1.442695, %v440_v55  ;;  %v441_v12 = vsub.f32 %v406_v41, %v433_v54 }
 0x2e5   :  { %v436_v56 = vpop.xlane.xlu0 %435 }
 0x2e6   :  { %v1737_v57 = vpop.eup %1736  ;;  %v442_v58 = vsub.f32 %v1633_v37, %v436_v56  ;;  %v451_v15 = vmul.f32 1.442695, %v441_v12 }
 0x2e7   :  { %v496_v60 = vpop.permute.xlu1 %495  ;;  %v458_v59 = vsel %vm417_vm2, %v1737_v57, 0.0 }
 0x2e8   :  { %v1739_v61 = vpop.eup %1738  ;;  %v453_v63 = vmul.f32 1.442695, %v442_v58  ;;  %459 = vadd.xlane.f32.xlu0 %v458_v59  ;;  %1635 = vmatprep.subr.bf16.mxu1 %v496_v60 }
 0x2e9   :  { %1636 = vmatpush3.bf16.msra.mxu1 %v496_v60  ;;  %v461_v2 = vsel %vm424_vm3, %v1739_v61, 0.0  ;;  %v1741_v3 = vpop.eup %1740 }
 0x2ea   :  { %1742 = vpow2.f32 %v453_v63  ;;  %462 = vadd.xlane.f32.xlu1 %v461_v2  ;;  %v455_v4 = vsel %vm417_vm2, %v1741_v3, 0.0 }
 0x2eb   :  { %1744 = vpow2.f32 %v449_v62 }
 0x2ec   :  { %1746 = vpow2.f32 %v451_v15 }
 0x2ee   :  { %456 = vadd.xlane.f32.xlu1 %v455_v4 }
 0x2f4   :  { %v1743_v5 = vpop.eup %1742 }
 0x2f5   :  { %v470_v6 = vsel %vm424_vm3, %v1743_v5, 0.0  ;;  %v1745_v9 = vpop.eup %1744 }
 0x2f6   :  { %471 = vadd.xlane.f32.xlu0 %v470_v6  ;;  %v464_v11 = vsel %vm417_vm2, %v1745_v9, 0.0  ;;  %v1747_v17 = vpop.eup %1746 }
 0x2f7   :  { %v467_v18 = vsel %vm417_vm2, %v1747_v17, 0.0 }
 0x2fa   :  { %465 = vadd.xlane.f32.xlu0 %v464_v11 }
 0x2ff   :  { %558 = vrot.lane.b32.xlu1 %v1922_v19, %s1788_s25 }
 0x310   :  { %497 = vrot.lane.b32.xlu0 %v1919_v0, %s1788_s25 }
 0x323   :  { %468 = vadd.xlane.f32.xlu1 %v467_v18 }
 0x334   :  { %560 = vrot.lane.b32.xlu1 %v1924_v20, %s1788_s25 }
 0x375   :  { %v460_v21 = vpop.xlane.xlu0 %459 }
 0x376   :  { %1748 = vrcp.f32 %v460_v21 }
 0x377   :  { %v463_v22 = vpop.xlane.xlu1 %462 }
 0x378   :  { %1750 = vrcp.f32 %v463_v22 }
 0x37b   :  { %v457_v23 = vpop.xlane.xlu1 %456 }
 0x37c   :  { %1752 = vrcp.f32 %v457_v23 }
 0x37f   :  { %v559_v32 = vpop.permute.xlu1 %558 }
 0x380   :  { %v1749_v19 = vpop.eup %1748 }
 0x381   :  { %v480_v24 = vmul.f32 %v1749_v19, %v1737_v57 }
 0x382   :  { %v1751_v25 = vpop.eup %1750 }
 0x383   :  { %v481_v26 = vmul.f32 %v1751_v25, %v1739_v61  ;;  %v472_v0 = vpop.xlane.xlu0 %471  ;;  %486 = vst.msk [vmem:[%s2227_s9 + $0x8] sm:$0xff] %vm417_vm2, %v480_v24 }
 0x384   :  { %1754 = vrcp.f32 %v472_v0 }
 0x385   :  { %487 = vst.msk [vmem:[%s2227_s9 + $0x10] sm:$0xf] %vm424_vm3, %v481_v26  ;;  %v492_v35 = vpack.c.bf16 %v481_v26, %v481_v26 }
 0x386   :  { %v1753_v20 = vpop.eup %1752 }
 0x387   :  { %v466_v27 = vpop.xlane.xlu0 %465  ;;  %v479_v28 = vmul.f32 %v1753_v20, %v1741_v3 }
 0x388   :  { %1756 = vrcp.f32 %v466_v27  ;;  %v1530_v27 = vld [vmem:[%s2229_s7] ss:$0 sm:$0xff] }
 0x389   :  { %485 = vst.msk [vmem:[%s2227_s9] sm:$0xff] %vm417_vm2, %v479_v28  ;;  %v491_v29 = vpack.c.bf16 %v480_v24, %v479_v28  ;;  %v681_v28 = vcombine.high %v1530_v27, %v1530_v27 }
 0x38b   :  { %v498_v30 = vpop.permute.xlu0 %497  ;;  %1639 = vmatprep.mubr.msk.bf16.mxu1 %vm417_vm2, %v491_v29  ;;  %v736_v29 = vcombine.low %v1530_v27, %v681_v28  ;;  %v738_v46 = vcombine.low %v681_v28, %v1530_v27 }
 0x38c   :  { %v508_v31 = vsel %vm506_vm4, %v498_v30, 0  ;;  %1715 = vmatprep.subr.msk.bf16.mxu1 %vm506_vm4, %v498_v30 }
 0x38d   :  { %1638 = vmatpush3.bf16.msra.mxu1 %v508_v31 }
 0x38e   :  { %v1755_v34 = vpop.eup %1754  ;;  %1643 = vmatprep.subr.bf16.mxu1 %v559_v32 }
 0x38f   :  { %v484_v36 = vmul.f32 %v1755_v34, %v1743_v5 }
 0x390   :  { %1640 = vmatmul.mubr.msk.bf16.vlgmr.msra.gmra.mrb[16].mxu1 %vm417_vm2, %v492_v35 }
 0x391   :  { %490 = vst.msk [vmem:[%s2227_s9 + $0x28] sm:$0xf] %vm424_vm3, %v484_v36  ;;  %1644 = vmatpush3.bf16.msra.mxu1 %v559_v32  ;;  %v494_v45 = vpack.c.bf16 %v484_v36, %v484_v36 }
 0x392   :  { %v1757_v37 = vpop.eup %1756 }
 0x393   :  { %v482_v38 = vmul.f32 %v1757_v37, %v1745_v9 }
 0x395   :  { %488 = vst.msk [vmem:[%s2227_s9 + $0x18] sm:$0xff] %vm417_vm2, %v482_v38 }
 0x3b0   :  { %v469_v39 = vpop.xlane.xlu1 %468 }
 0x3b1   :  { %1758 = vrcp.f32 %v469_v39 }
 0x3b4   :  { %v561_v40 = vpop.permute.xlu1 %560 }
 0x3b5   :  { %v570_v41 = vsel %vm506_vm4, %v561_v40, 0  ;;  %1716 = vmatprep.subr.msk.bf16.mxu1 %vm506_vm4, %v561_v40 }
 0x3b6   :  { %1646 = vmatpush3.bf16.msra.mxu1 %v570_v41 }
 0x3b7   :  { %1667 = vmatprep.subr.bf16.mxu1 %v1784_v1 }
 0x3bb   :  { %v1759_v42 = vpop.eup %1758 }
 0x3bc   :  { %v483_v43 = vmul.f32 %v1759_v42, %v1747_v17 }
 0x3be   :  { %489 = vst.msk [vmem:[%s2227_s9 + $0x20] sm:$0xff] %vm417_vm2, %v483_v43  ;;  %v493_v44 = vpack.c.bf16 %v483_v43, %v482_v38 }
 0x3c0   :  { %1647 = vmatprep.mubr.msk.bf16.mxu1 %vm417_vm2, %v493_v44 }
 0x3c1   :  { %1648 = vmatmul.mubr.msk.bf16.vlgmr.msra.gmra.mrb[20].mxu1 %vm417_vm2, %v494_v45  ;;  %v737_v45 = vcombine.low %v1530_v27, %v1530_v27 }
 0x3c2   :  { %1671 = vmatprep.mubr.msk.bf16.mxu1 %vm1785_vm0, %v1784_v1 }
 0x463   :  { %v1641_v48 = vpop.f32.mrb[16].mxu1 }
 0x464   :  { %v544_v49 = vpop.f32.mrb[17].mxu1  ;;  %v621_v3 = vpack.c.bf16 %v1641_v48, %v1641_v48 }
 0x465   :  { %v1642_v50 = vpop.f32.mrb[18].mxu1 }
 0x466   :  { %v547_v51 = vpop.f32.mrb[19].mxu1  ;;  %v655_v12 = vrot.slane %v621_v3, %v1880_v16 }
 0x467   :  { %v620_v52 = vpack.c.bf16 %v547_v51, %v544_v49  ;;  %v1531_v53 = vpack.c.bf16 %v547_v51, %v547_v51 }
 0x469   :  { %v639_v54 = vrot.slane %v620_v52, %v1880_v16  ;;  %v646_v55 = vrot.slane %v1531_v53, %v1880_v16 }
 0x46b   :  { %v647_v56 = vcombine.high %v639_v54, %v639_v54  ;;  %v648_v57 = vcombine.high %v646_v55, %v646_v55 }
 0x46d   :  { %v682_v58 = vcombine.low %v639_v54, %v647_v56  ;;  %v683_v60 = vcombine.low %v646_v55, %v648_v57 }
 0x46f   :  { %v690_v59 = vrot.slane %v682_v58, %v1880_v16  ;;  %v697_v61 = vrot.slane %v683_v60, %v1880_v16 }
 0x471   :  { %v698_v62 = vcombine.low %v690_v59, %v697_v61 }
 0x473   :  { %1656 = vmatmul.mubr.msk.bf16.vlgmr.msra.gmra.mrb[4].mxu0 %vm196_vm1, %v698_v62 }
 0x474   :  { %1659 = vmatprep.mubr.msk.bf16.mxu0 %vm1785_vm0, %v1784_v1 }
 0x494   :  { %v1649_v63 = vpop.f32.mrb[20].mxu1 }
 0x495   :  { %v606_v2 = vpop.f32.mrb[21].mxu1  ;;  %v623_v6 = vpack.c.bf16 %v1649_v63, %v1649_v63 }
 0x496   :  { %v1650_v4 = vpop.f32.mrb[22].mxu1 }
 0x497   :  { %v609_v5 = vpop.f32.mrb[23].mxu1  ;;  %v679_v18 = vrot.slane %v623_v6, %v1880_v16 }
 0x498   :  { %v622_v9 = vpack.c.bf16 %v609_v5, %v606_v2  ;;  %v1532_v11 = vpack.c.bf16 %v609_v5, %v609_v5 }
 0x49a   :  { %v663_v15 = vrot.slane %v622_v9, %v1880_v16  ;;  %v670_v17 = vrot.slane %v1532_v11, %v1880_v16 }
 0x49c   :  { %v671_v21 = vcombine.high %v663_v15, %v663_v15  ;;  %v672_v22 = vcombine.high %v670_v17, %v670_v17  ;;  %v699_v23 = vcombine.low %v655_v12, %v663_v15 }
 0x49e   :  { %v700_v19 = vcombine.low %v671_v21, %v670_v17  ;;  %v716_v24 = vcombine.low %v672_v22, %v679_v18  ;;  %v707_v25 = vrot.slane %v699_v23, %v1880_v16  ;;  %v1727_v23 = vld [vmem:[%s2230_s4 + $0x8] sm:$0xff]  }
 0x4a0   :  { %v714_v26 = vrot.slane %v700_v19, %v1880_v16  ;;  %v723_v20 = vrot.slane %v716_v24, %v1880_v16 }
 0x4a2   :  { %v715_v0 = vcombine.low %v707_v25, %v714_v26 }
 0x4a4   :  { %1660 = vmatmul.mubr.msk.bf16.gmra.mrb[8].mxu0 %vm196_vm1, %v715_v0 }
 0x4a5   :  { %1663 = vmatprep.mubr.msk.bf16.mxu0 %vm1785_vm0, %v1784_v1 }
 0x4ac   :  { %1664 = vmatmul.mubr.msk.bf16.gmra.mrb[12].mxu0 %vm196_vm1, %v723_v20 }
 0x4ad   :  { %1699 = vmatprep.mubr.msk.bf16.mxu0 %vm1785_vm0, %v1784_v1 }
 0x546   :  { %v785_v30 = vpop.f32.mrb[4].mxu0 }
 0x547   :  { %v786_v31 = vadd.f32 %v785_v30, %v736_v29  ;;  %v1657_v32 = vpop.f32.mrb[5].mxu0 }
 0x548   :  { %v788_v34 = vpop.f32.mrb[6].mxu0 }
 0x549   :  { %v812_v35 = vcombine.high %v786_v31, %v786_v31  ;;  %v789_v36 = vadd.f32 %v788_v34, %v736_v29  ;;  %v1658_v37 = vpop.f32.mrb[7].mxu0 }
 0x54b   :  { %v818_v38 = vcombine.low %v786_v31, %v812_v35  ;;  %v813_v39 = vcombine.high %v789_v36, %v789_v36 }
 0x54d   :  { %v819_v40 = vcombine.low %v789_v36, %v813_v39  ;;  %v826_v41 = vadd.f32 %v818_v38, %v1851_v7 }
 0x54f   :  { %v832_v42 = vsel %vm196_vm1, %v826_v41, 0.0  ;;  %v827_v43 = vadd.f32 %v819_v40, %v1856_v8 }
 0x550   :  { %833 = vadd.xlane.f32.xlu0 %v832_v42  ;;  %v1729_v42 = vld [vmem:[%s2231_s6 + $0x8] sm:$0xff]  }
 0x551   :  { %v835_v44 = vsel %vm196_vm1, %v827_v43, 0.0 }
 0x552   :  { %836 = vadd.xlane.f32.xlu1 %v835_v44 }
 0x577   :  { %v793_v47 = vpop.f32.mrb[8].mxu0 }
 0x578   :  { %v794_v48 = vadd.f32 %v793_v47, %v737_v45  ;;  %v1661_v49 = vpop.f32.mrb[9].mxu0 }
 0x579   :  { %v796_v50 = vpop.f32.mrb[10].mxu0 }
 0x57a   :  { %v814_v51 = vcombine.high %v794_v48, %v794_v48  ;;  %v797_v52 = vadd.f32 %v796_v50, %v738_v46  ;;  %v1662_v53 = vpop.f32.mrb[11].mxu0  ;;  %v828_v7 = vadd.f32 %v794_v48, %v1861_v10  ;;  %v1538_v50 = vld [vmem:[%s2229_s7 + $0x2] ss:$0 sm:$0xff] }
 0x57c   :  { %v820_v54 = vcombine.low %v814_v51, %v797_v52  ;;  %v839_v55 = vsel %vm838_vm5, %v828_v7, 0.0  ;;  %v815_v57 = vcombine.high %v797_v52, %v797_v52 }
 0x57d   :  { %840 = vadd.xlane.f32.xlu1 %v839_v55 }
 0x57e   :  { %v829_v8 = vadd.f32 %v820_v54, %v1871_v13  ;;  %v1539_v54 = vld [vmem:[%s2229_s7 + $0x3] ss:$0 sm:$0xff] }
 0x57f   :  { %v801_v56 = vpop.f32.mrb[12].mxu0 }
 0x580   :  { %v802_v58 = vadd.f32 %v801_v56, %v738_v46  ;;  %v1665_v60 = vpop.f32.mrb[13].mxu0  ;;  %v842_v59 = vsel %vm196_vm1, %v829_v8, 0.0 }
 0x581   :  { %843 = vadd.xlane.f32.xlu0 %v842_v59  ;;  %v804_v61 = vpop.f32.mrb[14].mxu0 }
 0x582   :  { %v816_v62 = vcombine.high %v802_v58, %v802_v58  ;;  %v821_v63 = vcombine.low %v815_v57, %v802_v58  ;;  %v1666_v2 = vpop.f32.mrb[15].mxu0 }
 0x584   :  { %v830_v3 = vadd.f32 %v821_v63, %v1876_v14  ;;  %v831_v4 = vadd.f32 %v816_v62, %v1896_v33  ;;  %v1726_v33 = vld [vmem:[%s2230_s4] sm:$0xff]  }
 0x585   :  { %1668 = vmatpush3.bf16.msra.mxu1 %v1726_v33 }
 0x586   :  { %v845_v10 = vsel %vm196_vm1, %v830_v3, 0.0  ;;  %v848_v13 = vsel %vm838_vm5, %v831_v4, 0.0  ;;  %1669 = vmatprep.subr.bf16.mxu1 %v1784_v1 }
 0x587   :  { %846 = vadd.xlane.f32.xlu0 %v845_v10 }
 0x589   :  { %1670 = vmatpush3.bf16.msra.mxu1 %v1727_v23 }
 0x58b   :  { %849 = vadd.xlane.f32.xlu0 %v848_v13 }
 0x5dd   :  { %v834_v5 = vpop.xlane.xlu0 %833 }
 0x5de   :  { %v852_v6 = vmul.f32 0.03125, %v834_v5 }
 0x5df   :  { %v837_v9 = vpop.xlane.xlu1 %836 }
 0x5e0   :  { %v858_v11 = vsub.f32 %v826_v41, %v852_v6  ;;  %v853_v12 = vmul.f32 0.03125, %v837_v9  ;;  %v1728_v41 = vld [vmem:[%s2231_s6] sm:$0xff]  }
 0x5e1   :  { %1684 = vmatpush3.bf16.msra.mxu0 %v1728_v41 }
 0x5e2   :  { %v859_v15 = vsub.f32 %v827_v43, %v853_v12  ;;  %v864_v17 = vmul.f32 %v858_v11, %v858_v11  ;;  %1685 = vmatprep.subr.bf16.mxu0 %v1784_v1 }
 0x5e4   :  { %v870_v18 = vsel %vm196_vm1, %v864_v17, 0.0  ;;  %v865_v21 = vmul.f32 %v859_v15, %v859_v15 }
 0x5e5   :  { %871 = vadd.xlane.f32.xlu1 %v870_v18  ;;  %1686 = vmatpush3.bf16.msra.mxu0 %v1729_v42 }
 0x5e6   :  { %v873_v14 = vsel %vm196_vm1, %v865_v21, 0.0  ;;  %1687 = vmatprep.subr.bf16.mxu0 %v1784_v1 }
 0x5e7   :  { %874 = vadd.xlane.f32.xlu0 %v873_v14 }
 0x60a   :  { %v841_v22 = vpop.xlane.xlu1 %840 }
 0x60b   :  { %v854_v19 = vmul.f32 0.03125, %v841_v22 }
 0x60d   :  { %v2052_v26 = vsub.f32 %v828_v7, %v854_v19 }
 0x60e   :  { %v844_v24 = vpop.xlane.xlu0 %843 }
 0x60f   :  { %v855_v25 = vmul.f32 0.03125, %v844_v24  ;;  %v866_v30 = vmul.f32 %v2052_v26, %v2052_v26 }
 0x611   :  { %v2054_v0 = vsub.f32 %v829_v8, %v855_v25  ;;  %v876_v35 = vsel %vm838_vm5, %v866_v30, 0.0 }
 0x613   :  { %v867_v20 = vmul.f32 %v2054_v0, %v2054_v0 }
 0x614   :  { %v847_v27 = vpop.xlane.xlu0 %846 }
 0x615   :  { %v856_v28 = vmul.f32 0.03125, %v847_v27  ;;  %v879_v29 = vsel %vm196_vm1, %v867_v20, 0.0 }
 0x616   :  { %880 = vadd.xlane.f32.xlu1 %v879_v29 }
 0x617   :  { %v2061_v31 = vsub.f32 %v830_v3, %v856_v28 }
 0x618   :  { %v850_v32 = vpop.xlane.xlu0 %849 }
 0x619   :  { %v857_v34 = vmul.f32 0.03125, %v850_v32  ;;  %v868_v36 = vmul.f32 %v2061_v31, %v2061_v31 }
 0x61a   :  { %877 = vadd.xlane.f32.xlu1 %v876_v35 }
 0x61b   :  { %v2066_v37 = vsub.f32 %v831_v4, %v857_v34  ;;  %v882_v38 = vsel %vm196_vm1, %v868_v36, 0.0 }
 0x61c   :  { %883 = vadd.xlane.f32.xlu0 %v882_v38 }
 0x61d   :  { %v869_v39 = vmul.f32 %v2066_v37, %v2066_v37 }
 0x61f   :  { %v885_v40 = vsel %vm838_vm5, %v869_v39, 0.0 }
 0x620   :  { %886 = vadd.xlane.f32.xlu0 %v885_v40 }
 0x672   :  { %v872_v43 = vpop.xlane.xlu1 %871 }
 0x673   :  { %v888_v44 = vmul.f32 0.03125, %v872_v43 }
 0x674   :  { %v875_v45 = vpop.xlane.xlu0 %874 }
 0x675   :  { %v894_v46 = vadd.f32 1e-05, %v888_v44  ;;  %v889_v47 = vmul.f32 0.03125, %v875_v45 }
 0x677   :  { %1760 = vrsqrt.f32 %v894_v46  ;;  %v895_v48 = vadd.f32 1e-05, %v889_v47 }
 0x679   :  { %1762 = vrsqrt.f32 %v895_v48 }
 0x681   :  { %v1761_v49 = vpop.eup %1760 }
 0x682   :  { %v906_v51 = vmul.f32 %v1761_v49, %v858_v11 }
 0x683   :  { %v1763_v52 = vpop.eup %1762 }
 0x684   :  { %v916_v53 = vmul.f32 %v1538_v50, %v906_v51  ;;  %v907_v7 = vmul.f32 %v1763_v52, %v859_v15 }
 0x686   :  { %v917_v55 = vmul.f32 %v1538_v50, %v907_v7  ;;  %v2086_v8 = vadd.f32 %v1539_v54, %v916_v53  ;;  %v1730_v53 = vld [vmem:[%s2231_s6 + $0x10] sm:$0xff]   ;;  %v1731_v7 = vld [vmem:[%s2231_s6 + $0x18] sm:$0xff]  }
 0x687   :  { %1688 = vmatpush3.bf16.msra.mxu0 %v1730_v53 }
 0x688   :  { %v2088_v56 = vadd.f32 %v1539_v54, %v917_v55  ;;  %1689 = vmatprep.subr.bf16.mxu0 %v1784_v1  ;;  %v1733_v55 = vld [vmem:[%s2231_s6 + $0x28] sm:$0xff]  }
 0x68a   :  { %v932_v57 = vpack.c.bf16 %v2088_v56, %v2086_v8  ;;  %v1541_v58 = vpack.c.bf16 %v2088_v56, %v2088_v56 }
 0x68b   :  { %1690 = vmatpush3.bf16.msra.mxu0 %v1731_v7 }
 0x68c   :  { %v952_v60 = vrot.slane %v932_v57, %v1880_v16  ;;  %v959_v59 = vrot.slane %v1541_v58, %v1880_v16  ;;  %1691 = vmatprep.subr.bf16.mxu0 %v1784_v1  ;;  %v1734_v57 = vld [vmem:[%s2231_s6 + $0x30] sm:$0xff]   ;;  %v1735_v58 = vld [vmem:[%s2231_s6 + $0x38] sm:$0xff]  }
 0x68e   :  { %v960_v61 = vcombine.high %v952_v60, %v952_v60  ;;  %v961_v62 = vcombine.high %v959_v59, %v959_v59 }
 0x690   :  { %v994_v63 = vcombine.low %v952_v60, %v960_v61  ;;  %v995_v2 = vcombine.low %v959_v59, %v961_v62  ;;  %v1540_v60 = vld [vmem:[%s2232_s5] ss:$0 sm:$0xff] }
 0x691   :  { %v993_v59 = vcombine.high %v1540_v60, %v1540_v60 }
 0x692   :  { %v1002_v3 = vrot.slane %v994_v63, %v1880_v16  ;;  %v1009_v10 = vrot.slane %v995_v2, %v1880_v16 }
 0x693   :  { %v1048_v61 = vcombine.low %v1540_v60, %v993_v59 }
 0x694   :  { %v1010_v4 = vcombine.low %v1002_v3, %v1009_v10 }
 0x696   :  { %1672 = vmatmul.mubr.msk.bf16.vlgmr.msra.gmra.mrb[24].mxu1 %vm196_vm1, %v1010_v4 }
 0x697   :  { %1675 = vmatprep.mubr.msk.bf16.mxu1 %vm1785_vm0, %v1784_v1 }
 0x6a3   :  { %v881_v13 = vpop.xlane.xlu1 %880 }
 0x6a4   :  { %v891_v5 = vmul.f32 0.03125, %v881_v13 }
 0x6a6   :  { %v897_v6 = vadd.f32 1e-05, %v891_v5 }
 0x6a7   :  { %v878_v9 = vpop.xlane.xlu1 %877 }
 0x6a8   :  { %1764 = vrsqrt.f32 %v897_v6  ;;  %v890_v11 = vmul.f32 0.03125, %v878_v9 }
 0x6a9   :  { %v884_v12 = vpop.xlane.xlu0 %883 }
 0x6aa   :  { %v896_v15 = vadd.f32 1e-05, %v890_v11  ;;  %v892_v17 = vmul.f32 0.03125, %v884_v12 }
 0x6ac   :  { %1766 = vrsqrt.f32 %v896_v15  ;;  %v898_v18 = vadd.f32 1e-05, %v892_v17 }
 0x6ad   :  { %v887_v21 = vpop.xlane.xlu0 %886 }
 0x6ae   :  { %1768 = vrsqrt.f32 %v898_v18  ;;  %v893_v14 = vmul.f32 0.03125, %v887_v21 }
 0x6b0   :  { %v899_v33 = vadd.f32 1e-05, %v893_v14 }
 0x6b2   :  { %v1765_v22 = vpop.eup %1764  ;;  %1770 = vrsqrt.f32 %v899_v33 }
 0x6b3   :  { %v909_v23 = vmul.f32 %v1765_v22, %v2054_v0 }
 0x6b5   :  { %v919_v20 = vmul.f32 %v1538_v50, %v909_v23 }
 0x6b6   :  { %v1767_v19 = vpop.eup %1766 }
 0x6b7   :  { %v908_v24 = vmul.f32 %v1767_v19, %v2052_v26  ;;  %v2106_v34 = vadd.f32 %v1539_v54, %v919_v20 }
 0x6b8   :  { %v1769_v25 = vpop.eup %1768 }
 0x6b9   :  { %v918_v27 = vmul.f32 %v1538_v50, %v908_v24  ;;  %v910_v28 = vmul.f32 %v1769_v25, %v2061_v31 }
 0x6bb   :  { %v2104_v29 = vadd.f32 %v1539_v54, %v918_v27  ;;  %v920_v30 = vmul.f32 %v1538_v50, %v910_v28  ;;  %v1049_v28 = vcombine.low %v1540_v60, %v1540_v60 }
 0x6bc   :  { %v1771_v32 = vpop.eup %1770 }
 0x6bd   :  { %v2108_v35 = vadd.f32 %v1539_v54, %v920_v30  ;;  %v911_v36 = vmul.f32 %v1771_v32, %v2066_v37  ;;  %v933_v0 = vpack.c.bf16 %v2104_v29, %v2104_v29  ;;  %v1050_v30 = vcombine.low %v993_v59, %v1540_v60 }
 0x6bf   :  { %v921_v38 = vmul.f32 %v1538_v50, %v911_v36  ;;  %v934_v26 = vpack.c.bf16 %v2108_v35, %v2106_v34  ;;  %v1542_v31 = vpack.c.bf16 %v2108_v35, %v2108_v35  ;;  %v968_v39 = vrot.slane %v933_v0, %v1880_v16 }
 0x6c1   :  { %v976_v40 = vrot.slane %v934_v26, %v1880_v16  ;;  %v2119_v41 = vadd.f32 %v1539_v54, %v921_v38  ;;  %v983_v42 = vrot.slane %v1542_v31, %v1880_v16  ;;  %v1732_v54 = vld [vmem:[%s2231_s6 + $0x20] sm:$0xff]  }
 0x6c2   :  { %1692 = vmatpush3.bf16.msra.mxu0 %v1732_v54 }
 0x6c3   :  { %v984_v43 = vcombine.high %v976_v40, %v976_v40  ;;  %v1011_v37 = vcombine.low %v968_v39, %v976_v40  ;;  %v935_v45 = vpack.c.bf16 %v2119_v41, %v2119_v41  ;;  %v985_v50 = vcombine.high %v983_v42, %v983_v42  ;;  %1693 = vmatprep.subr.bf16.mxu0 %v1784_v1 }
 0x6c5   :  { %v1012_v44 = vcombine.low %v984_v43, %v983_v42  ;;  %v1019_v46 = vrot.slane %v1011_v37, %v1880_v16  ;;  %v992_v49 = vrot.slane %v935_v45, %v1880_v16 }
 0x6c6   :  { %1694 = vmatpush3.bf16.msra.mxu0 %v1733_v55 }
 0x6c7   :  { %v1026_v47 = vrot.slane %v1012_v44, %v1880_v16  ;;  %v1028_v51 = vcombine.low %v985_v50, %v992_v49  ;;  %1695 = vmatprep.subr.bf16.mxu0 %v1784_v1 }
 0x6c9   :  { %v1027_v48 = vcombine.low %v1019_v46, %v1026_v47  ;;  %v1035_v52 = vrot.slane %v1028_v51, %v1880_v16 }
 0x6ca   :  { %1696 = vmatpush3.bf16.msra.mxu0 %v1734_v57 }
 0x6cb   :  { %1676 = vmatmul.mubr.msk.bf16.gmra.mrb[28].mxu1 %vm196_vm1, %v1027_v48  ;;  %1697 = vmatprep.subr.bf16.mxu0 %v1784_v1 }
 0x6cc   :  { %1679 = vmatprep.mubr.msk.bf16.mxu1 %vm1785_vm0, %v1784_v1 }
 0x6ce   :  { %1698 = vmatpush3.bf16.msra.mxu0 %v1735_v58 }
 0x6d3   :  { %1680 = vmatmul.mubr.msk.bf16.gmra.mrb[32].mxu1 %vm196_vm1, %v1035_v52 }
 0x769   :  { %v1097_v62 = vpop.f32.mrb[24].mxu1 }
 0x76a   :  { %v1098_v63 = vadd.f32 %v1097_v62, %v1048_v61  ;;  %v1673_v2 = vpop.f32.mrb[25].mxu1 }
 0x76b   :  { %v1100_v3 = vpop.f32.mrb[26].mxu1 }
 0x76c   :  { %v1124_v10 = vcombine.high %v1098_v63, %v1098_v63  ;;  %v1101_v4 = vadd.f32 %v1100_v3, %v1048_v61  ;;  %v1674_v13 = vpop.f32.mrb[27].mxu1  ;;  %v1134_v9 = vmax.f32 %v1098_v63, 0.0 }
 0x76e   :  { %v1135_v5 = vmax.f32 %v1124_v10, 0.0  ;;  %v1125_v6 = vcombine.high %v1101_v4, %v1101_v4  ;;  %v1136_v11 = vmax.f32 %v1101_v4, 0.0 }
 0x770   :  { %v1137_v12 = vmax.f32 %v1125_v6, 0.0  ;;  %v1152_v15 = vcombine.low %v1134_v9, %v1135_v5 }
 0x772   :  { %v1153_v17 = vcombine.low %v1136_v11, %v1137_v12  ;;  %v1548_v11 = vld [vmem:[%s2229_s7 + $0x1] ss:$0 sm:$0xff] }
 0x773   :  { %v1221_v12 = vcombine.high %v1548_v11, %v1548_v11 }
 0x774   :  { %v1160_v18 = vpack.c.bf16 %v1153_v17, %v1152_v15  ;;  %v1549_v21 = vpack.c.bf16 %v1153_v17, %v1153_v17 }
 0x775   :  { %v1315_v15 = vcombine.low %v1548_v11, %v1221_v12 }
 0x776   :  { %v1179_v14 = vrot.slane %v1160_v18, %v1880_v16  ;;  %v1186_v33 = vrot.slane %v1549_v21, %v1880_v16 }
 0x778   :  { %v1187_v22 = vcombine.high %v1179_v14, %v1179_v14  ;;  %v1188_v23 = vcombine.high %v1186_v33, %v1186_v33 }
 0x77a   :  { %v1222_v19 = vcombine.low %v1179_v14, %v1187_v22  ;;  %v1223_v24 = vcombine.low %v1186_v33, %v1188_v23 }
 0x77c   :  { %v1230_v25 = vrot.slane %v1222_v19, %v1880_v16  ;;  %v1237_v20 = vrot.slane %v1223_v24, %v1880_v16 }
 0x77e   :  { %v1238_v27 = vcombine.low %v1230_v25, %v1237_v20 }
 0x780   :  { %1700 = vmatmul.mubr.bf16.vlgmr.msra.gmra.mrb[16].mxu0 %v1238_v27 }
 0x781   :  { %1703 = vmatprep.mubr.msk.bf16.mxu0 %vm1785_vm0, %v1784_v1 }
 0x79e   :  { %v1105_v32 = vpop.f32.mrb[28].mxu1 }
 0x79f   :  { %v1106_v36 = vadd.f32 %v1105_v32, %v1049_v28  ;;  %v1677_v0 = vpop.f32.mrb[29].mxu1  ;;  %v1316_v28 = vcombine.low %v1548_v11, %v1548_v11 }
 0x7a0   :  { %v1108_v38 = vpop.f32.mrb[30].mxu1 }
 0x7a1   :  { %v1126_v26 = vcombine.high %v1106_v36, %v1106_v36  ;;  %v1109_v31 = vadd.f32 %v1108_v38, %v1050_v30  ;;  %v1678_v39 = vpop.f32.mrb[31].mxu1  ;;  %v1138_v45 = vmax.f32 %v1106_v36, 0.0 }
 0x7a3   :  { %v1139_v40 = vmax.f32 %v1126_v26, 0.0  ;;  %v1140_v42 = vmax.f32 %v1109_v31, 0.0  ;;  %v1127_v43 = vcombine.high %v1109_v31, %v1109_v31  ;;  %v1161_v53 = vpack.c.bf16 %v1138_v45, %v1138_v45 }
 0x7a5   :  { %v1154_v37 = vcombine.low %v1139_v40, %v1140_v42  ;;  %v1141_v49 = vmax.f32 %v1127_v43, 0.0  ;;  %v1195_v60 = vrot.slane %v1161_v53, %v1880_v16 }
 0x7a6   :  { %v1113_v44 = vpop.f32.mrb[32].mxu1 }
 0x7a7   :  { %v1114_v46 = vadd.f32 %v1113_v44, %v1050_v30  ;;  %v1681_v47 = vpop.f32.mrb[33].mxu1  ;;  %v1317_v30 = vcombine.low %v1221_v12, %v1548_v11 }
 0x7a8   :  { %v1116_v48 = vpop.f32.mrb[34].mxu1 }
 0x7a9   :  { %v1128_v50 = vcombine.high %v1114_v46, %v1114_v46  ;;  %v1142_v51 = vmax.f32 %v1114_v46, 0.0  ;;  %v1682_v52 = vpop.f32.mrb[35].mxu1 }
 0x7ab   :  { %v1143_v7 = vmax.f32 %v1128_v50, 0.0  ;;  %v1155_v54 = vcombine.low %v1141_v49, %v1142_v51 }
 0x7ad   :  { %v1162_v55 = vpack.c.bf16 %v1155_v54, %v1154_v37  ;;  %v1163_v57 = vpack.c.bf16 %v1143_v7, %v1143_v7  ;;  %v1550_v58 = vpack.c.bf16 %v1155_v54, %v1155_v54 }
 0x7af   :  { %v1203_v59 = vrot.slane %v1162_v55, %v1880_v16  ;;  %v1210_v61 = vrot.slane %v1550_v58, %v1880_v16  ;;  %v1219_v62 = vrot.slane %v1163_v57, %v1880_v16 }
 0x7b1   :  { %v1211_v63 = vcombine.high %v1203_v59, %v1203_v59  ;;  %v1239_v2 = vcombine.low %v1195_v60, %v1203_v59  ;;  %v1212_v3 = vcombine.high %v1210_v61, %v1210_v61 }
 0x7b3   :  { %v1240_v10 = vcombine.low %v1211_v63, %v1210_v61  ;;  %v1256_v4 = vcombine.low %v1212_v3, %v1219_v62  ;;  %v1247_v13 = vrot.slane %v1239_v2, %v1880_v16 }
 0x7b5   :  { %v1254_v5 = vrot.slane %v1240_v10, %v1880_v16  ;;  %v1263_v9 = vrot.slane %v1256_v4, %v1880_v16 }
 0x7b7   :  { %v1255_v6 = vcombine.low %v1247_v13, %v1254_v5 }
 0x7b9   :  { %1704 = vmatmul.mubr.bf16.gmra.mrb[20].mxu0 %v1255_v6 }
 0x7ba   :  { %1707 = vmatprep.mubr.msk.bf16.mxu0 %vm1785_vm0, %v1784_v1 }
 0x7c1   :  { %1708 = vmatmul.mubr.bf16.gmra.mrb[24].mxu0 %v1263_v9 }
 0x853   :  { %v1355_v17 = vpop.f32.mrb[16].mxu0 }
 0x854   :  { %v1356_v18 = vadd.f32 %v1355_v17, %v1315_v15  ;;  %v1701_v21 = vpop.f32.mrb[17].mxu0 }
 0x855   :  { %v1358_v14 = vpop.f32.mrb[18].mxu0 }
 0x856   :  { %v1382_v33 = vcombine.high %v1356_v18, %v1356_v18  ;;  %v1359_v22 = vadd.f32 %v1358_v14, %v1315_v15  ;;  %v1702_v23 = vpop.f32.mrb[19].mxu0 }
 0x858   :  { %v1388_v19 = vcombine.low %v1356_v18, %v1382_v33  ;;  %v1383_v24 = vcombine.high %v1359_v22, %v1359_v22 }
 0x85a   :  { %v1389_v25 = vcombine.low %v1359_v22, %v1383_v24  ;;  %v1396_v1 = vadd.f32 %v1388_v19, %v2086_v8 }
 0x85c   :  { %v1402_v16 = vsel %vm196_vm1, %v1396_v1, 0.0  ;;  %v1397_v20 = vadd.f32 %v1389_v25, %v2088_v56 }
 0x85d   :  { %1403 = vadd.xlane.f32.xlu1 %v1402_v16 }
 0x85e   :  { %v1405_v27 = vsel %vm196_vm1, %v1397_v20, 0.0 }
 0x85f   :  { %1406 = vadd.xlane.f32.xlu0 %v1405_v27  ;;  %v1559_v27 = vld [vmem:[%s2229_s7 + $0x4] ss:$0 sm:$0xff] }
 0x88c   :  { %v1363_v32 = vpop.f32.mrb[20].mxu0 }
 0x88d   :  { %v1364_v36 = vadd.f32 %v1363_v32, %v1316_v28  ;;  %v1705_v0 = vpop.f32.mrb[21].mxu0  ;;  %v1560_v32 = vld [vmem:[%s2229_s7 + $0x5] ss:$0 sm:$0xff] }
 0x88e   :  { %v1366_v38 = vpop.f32.mrb[22].mxu0 }
 0x88f   :  { %v1384_v26 = vcombine.high %v1364_v36, %v1364_v36  ;;  %v1367_v31 = vadd.f32 %v1366_v38, %v1317_v30  ;;  %v1706_v39 = vpop.f32.mrb[23].mxu0  ;;  %v1398_v40 = vadd.f32 %v1364_v36, %v2104_v29 }
 0x891   :  { %v1390_v8 = vcombine.low %v1384_v26, %v1367_v31  ;;  %v1408_v42 = vsel %vm838_vm5, %v1398_v40, 0.0  ;;  %v1385_v37 = vcombine.high %v1367_v31, %v1367_v31 }
 0x892   :  { %1409 = vadd.xlane.f32.xlu1 %v1408_v42 }
 0x893   :  { %v1399_v56 = vadd.f32 %v1390_v8, %v2106_v34 }
 0x894   :  { %v1371_v43 = vpop.f32.mrb[24].mxu0 }
 0x895   :  { %v1372_v44 = vadd.f32 %v1371_v43, %v1317_v30  ;;  %v1709_v45 = vpop.f32.mrb[25].mxu0  ;;  %v1411_v46 = vsel %vm196_vm1, %v1399_v56, 0.0 }
 0x896   :  { %1412 = vadd.xlane.f32.xlu0 %v1411_v46  ;;  %v1374_v47 = vpop.f32.mrb[26].mxu0 }
 0x897   :  { %v1386_v48 = vcombine.high %v1372_v44, %v1372_v44  ;;  %v1391_v49 = vcombine.low %v1385_v37, %v1372_v44  ;;  %v1710_v50 = vpop.f32.mrb[27].mxu0 }
 0x899   :  { %v1400_v51 = vadd.f32 %v1391_v49, %v2108_v35  ;;  %v1401_v29 = vadd.f32 %v1386_v48, %v2119_v41 }
 0x89b   :  { %v1414_v52 = vsel %vm196_vm1, %v1400_v51, 0.0  ;;  %v1417_v53 = vsel %vm838_vm5, %v1401_v29, 0.0 }
 0x89c   :  { %1415 = vadd.xlane.f32.xlu1 %v1414_v52  ;;  %1418 = vadd.xlane.f32.xlu0 %v1417_v53 }
 0x8ea   :  { %v1404_v34 = vpop.xlane.xlu1 %1403 }
 0x8eb   :  { %v1420_v7 = vmul.f32 0.03125, %v1404_v34 }
 0x8ec   :  { %v1407_v54 = vpop.xlane.xlu0 %1406 }
 0x8ed   :  { %v1426_v55 = vsub.f32 %v1396_v1, %v1420_v7  ;;  %v1421_v57 = vmul.f32 0.03125, %v1407_v54 }
 0x8ef   :  { %v1427_v58 = vsub.f32 %v1397_v20, %v1421_v57  ;;  %v1432_v60 = vmul.f32 %v1426_v55, %v1426_v55 }
 0x8f1   :  { %v1438_v59 = vsel %vm196_vm1, %v1432_v60, 0.0  ;;  %v1433_v61 = vmul.f32 %v1427_v58, %v1427_v58 }
 0x8f2   :  { %1439 = vadd.xlane.f32.xlu1 %v1438_v59 }
 0x8f3   :  { %v1441_v35 = vsel %vm196_vm1, %v1433_v61, 0.0 }
 0x8f4   :  { %1442 = vadd.xlane.f32.xlu0 %v1441_v35 }
 0x91f   :  { %v1410_v41 = vpop.xlane.xlu1 %1409 }
 0x920   :  { %v1422_v62 = vmul.f32 0.03125, %v1410_v41 }
 0x922   :  { %v1428_v63 = vsub.f32 %v1398_v40, %v1422_v62 }
 0x923   :  { %v1413_v2 = vpop.xlane.xlu0 %1412 }
 0x924   :  { %v1423_v3 = vmul.f32 0.03125, %v1413_v2  ;;  %v1434_v10 = vmul.f32 %v1428_v63, %v1428_v63 }
 0x926   :  { %v1429_v4 = vsub.f32 %v1399_v56, %v1423_v3  ;;  %v1444_v13 = vsel %vm838_vm5, %v1434_v10, 0.0 }
 0x927   :  { %1445 = vadd.xlane.f32.xlu1 %v1444_v13 }
 0x928   :  { %v1435_v5 = vmul.f32 %v1429_v4, %v1429_v4 }
 0x929   :  { %v1419_v6 = vpop.xlane.xlu0 %1418  ;;  %v1416_v9 = vpop.xlane.xlu1 %1415 }
 0x92a   :  { %v1425_v11 = vmul.f32 0.03125, %v1419_v6  ;;  %v1424_v12 = vmul.f32 0.03125, %v1416_v9  ;;  %v1447_v15 = vsel %vm196_vm1, %v1435_v5, 0.0 }
 0x92b   :  { %1448 = vadd.xlane.f32.xlu0 %v1447_v15 }
 0x92c   :  { %v1431_v17 = vsub.f32 %v1401_v29, %v1425_v11  ;;  %v1430_v18 = vsub.f32 %v1400_v51, %v1424_v12 }
 0x92e   :  { %v1437_v21 = vmul.f32 %v1431_v17, %v1431_v17  ;;  %v1436_v14 = vmul.f32 %v1430_v18, %v1430_v18 }
 0x930   :  { %v1453_v33 = vsel %vm838_vm5, %v1437_v21, 0.0  ;;  %v1450_v22 = vsel %vm196_vm1, %v1436_v14, 0.0 }
 0x931   :  { %1454 = vadd.xlane.f32.xlu0 %v1453_v33  ;;  %1451 = vadd.xlane.f32.xlu1 %v1450_v22 }
 0x97f   :  { %v1440_v23 = vpop.xlane.xlu1 %1439 }
 0x980   :  { %v1456_v19 = vmul.f32 0.03125, %v1440_v23 }
 0x981   :  { %v1443_v24 = vpop.xlane.xlu0 %1442 }
 0x982   :  { %v1462_v25 = vadd.f32 1e-05, %v1456_v19  ;;  %v1457_v1 = vmul.f32 0.03125, %v1443_v24 }
 0x984   :  { %1772 = vrsqrt.f32 %v1462_v25  ;;  %v1463_v16 = vadd.f32 1e-05, %v1457_v1 }
 0x986   :  { %1774 = vrsqrt.f32 %v1463_v16 }
 0x98e   :  { %v1773_v20 = vpop.eup %1772 }
 0x98f   :  { %v1474_v28 = vmul.f32 %v1773_v20, %v1426_v55 }
 0x990   :  { %v1775_v30 = vpop.eup %1774 }
 0x991   :  { %v1484_v36 = vmul.f32 %v1559_v27, %v1474_v28  ;;  %v1475_v0 = vmul.f32 %v1775_v30, %v1427_v58 }
 0x993   :  { %v1494_v38 = vadd.f32 %v1560_v32, %v1484_v36  ;;  %v1485_v26 = vmul.f32 %v1559_v27, %v1475_v0 }
 0x995   :  { %1500 = vst.msk [vmem:[%s2233_s8] sm:$0xff] %vm196_vm1, %v1494_v38  ;;  %v1495_v31 = vadd.f32 %v1560_v32, %v1485_v26 }
 0x997   :  { %1501 = vst.msk [vmem:[%s2233_s8 + $0x8] sm:$0xff] %vm196_vm1, %v1495_v31 }
 0x9b4   :  { %v1446_v39 = vpop.xlane.xlu1 %1445 }
 0x9b5   :  { %v1458_v40 = vmul.f32 0.03125, %v1446_v39 }
 0x9b7   :  { %v1464_v8 = vadd.f32 1e-05, %v1458_v40 }
 0x9b8   :  { %v1449_v42 = vpop.xlane.xlu0 %1448 }
 0x9b9   :  { %1776 = vrsqrt.f32 %v1464_v8  ;;  %v1459_v56 = vmul.f32 0.03125, %v1449_v42 }
 0x9bb   :  { %v1465_v43 = vadd.f32 1e-05, %v1459_v56 }
 0x9bd   :  { %1778 = vrsqrt.f32 %v1465_v43 }
 0x9be   :  { %v1455_v37 = vpop.xlane.xlu0 %1454  ;;  %v1452_v44 = vpop.xlane.xlu1 %1451 }
 0x9bf   :  { %v1461_v45 = vmul.f32 0.03125, %v1455_v37  ;;  %v1460_v46 = vmul.f32 0.03125, %v1452_v44 }
 0x9c1   :  { %v1467_v47 = vadd.f32 1e-05, %v1461_v45  ;;  %v1466_v48 = vadd.f32 1e-05, %v1460_v46 }
 0x9c3   :  { %v1777_v49 = vpop.eup %1776  ;;  %1780 = vrsqrt.f32 %v1467_v47 }
 0x9c4   :  { %v1476_v50 = vmul.f32 %v1777_v49, %v1428_v63  ;;  %1782 = vrsqrt.f32 %v1466_v48 }
 0x9c6   :  { %v1486_v51 = vmul.f32 %v1559_v27, %v1476_v50 }
 0x9c7   :  { %v1779_v29 = vpop.eup %1778 }
 0x9c8   :  { %v1496_v52 = vadd.f32 %v1560_v32, %v1486_v51  ;;  %v1477_v53 = vmul.f32 %v1779_v29, %v1429_v4 }
 0x9ca   :  { %1502 = vst.msk [vmem:[%s2233_s8 + $0x10] sm:$0xf] %vm838_vm5, %v1496_v52  ;;  %v1487_v34 = vmul.f32 %v1559_v27, %v1477_v53 }
 0x9cc   :  { %v1497_v7 = vadd.f32 %v1560_v32, %v1487_v34 }
 0x9cd   :  { %v1781_v54 = vpop.eup %1780 }
 0x9ce   :  { %v1783_v55 = vpop.eup %1782  ;;  %1503 = vst.msk [vmem:[%s2233_s8 + $0x18] sm:$0xff] %vm196_vm1, %v1497_v7  ;;  %v1479_v57 = vmul.f32 %v1781_v54, %v1431_v17 }
 0x9cf   :  { %v1478_v58 = vmul.f32 %v1783_v55, %v1430_v18 }
 0x9d0   :  { %v1489_v60 = vmul.f32 %v1559_v27, %v1479_v57 }
 0x9d1   :  { %v1488_v59 = vmul.f32 %v1559_v27, %v1478_v58 }
 0x9d2   :  { %v1499_v61 = vadd.f32 %v1560_v32, %v1489_v60 }
 0x9d3   :  { %v1498_v35 = vadd.f32 %v1560_v32, %v1488_v59 }
 0x9d4   :  { %1505 = vst.msk [vmem:[%s2233_s8 + $0x28] sm:$0xf] %vm838_vm5, %v1499_v61 }
 0x9d5   :  { %1504 = vst.msk [vmem:[%s2233_s8 + $0x20] sm:$0xff] %vm196_vm1, %v1498_v35 }

</bundles_post_ra>
